<compile_context>
chip_gen: v7x
topology: tpu7x:2x2x1
jax: 0.10.0
libtpu: 0.0.40
codegen_flags: <defaults>
</compile_context>

<pallas_src>
import functools

import jax
import jax.numpy as jnp
from jax.experimental import pallas as pl
from jax.experimental.pallas import tpu as pltpu


def _round_up(x, m):
    return ((x + m - 1) // m) * m


def _gated_fusion_kernel(a_ref, b_ref, c_ref, w_ref, o_ref, *,
                         tn, single_col_tile, approx_recip):
    # Inputs / weight stay in their storage dtype (bf16 stays bf16 -> MXU-native
    # bf16 x bf16 -> f32 path); only the softmax / gating math is f32.
    a = a_ref[...]
    b = b_ref[...]
    c = c_ref[...]
    w = w_ref[...]

    fa = jnp.dot(a, w, preferred_element_type=jnp.float32)   # (tm, tn)
    fb = jnp.dot(b, w, preferred_element_type=jnp.float32)
    fc = jnp.dot(c, w, preferred_element_type=jnp.float32)

    # Raw-input values at the same output-column window (for the gating).
    if single_col_tile:
        a_g, b_g, c_g = a, b, c
    else:
        col0 = pl.multiple_of(pl.program_id(1) * tn, tn)
        a_g = a_ref[:, pl.ds(col0, tn)]
        b_g = b_ref[:, pl.ds(col0, tn)]
        c_g = c_ref[:, pl.ds(col0, tn)]

    # Numerically stable 3-way softmax over the modality axis, fused with the
    # gating as a running accumulation (fewer live (tm, tn) f32 temporaries).
    m = jnp.maximum(jnp.maximum(fa, fb), fc)

    ea = jnp.exp(fa - m)
    acc = ea * a_g.astype(jnp.float32)
    denom = ea

    eb = jnp.exp(fb - m)
    acc = acc + eb * b_g.astype(jnp.float32)
    denom = denom + eb

    ec = jnp.exp(fc - m)
    acc = acc + ec * c_g.astype(jnp.float32)
    denom = denom + ec

    inv = pl.reciprocal(denom, approx=approx_recip)
    o_ref[...] = (acc * inv).astype(o_ref.dtype)


def multimodal_gated_fusion(a, b, c, weight, *, row_tile=None):
    """a, b, c: (..., hidden). weight: (hidden, hidden) as in nn.Linear (out, in)."""
    orig_shape = a.shape
    hidden = orig_shape[-1]
    a2 = a.reshape(-1, hidden)
    b2 = b.reshape(-1, hidden)
    c2 = c.reshape(-1, hidden)
    n = a2.shape[0]

    in_dtype = a2.dtype
    itemsize = jnp.dtype(in_dtype).itemsize

    # Lane-dense hidden: pad to a multiple of 128.  Zero padding is exact here:
    # padded columns give fc == 0 for all modalities -> softmax 1/3 each ->
    # gated sum of zero inputs == 0, and zero weight rows add nothing to the
    # real output columns.
    hidden_pad = max(128, _round_up(hidden, 128))

    # ---- column (output / weight) tile ----
    # Keep the double-buffered weight block inside a fixed VMEM budget
    # (v7x has only 64 MiB of VMEM).  Prefer a tile that divides hidden_pad
    # exactly so no extra zero columns are streamed.
    weight_budget = 16 * 1024 * 1024
    if 2 * hidden_pad * hidden_pad * itemsize <= weight_budget:
        tn = hidden_pad
    else:
        tn_cap = max(128, (weight_budget // (2 * hidden_pad * itemsize)) // 128 * 128)
        tn = 128
        for cand in range(tn_cap, 127, -128):
            if hidden_pad % cand == 0:
                tn = cand
                break
    n_col = hidden_pad // tn

    # ---- row tile ----
    if row_tile is None:
        # Largest tile that keeps the three double-buffered input blocks plus
        # the f32 softmax/gating temporaries comfortably inside VMEM, next to
        # the weight block's budget.
        row_budget = 20 * 1024 * 1024
        per_row = hidden_pad * (3 * 2 + 3) * itemsize + tn * (2 * itemsize + 8 * 4)
        tm = max(8, min(1024, (row_budget // per_row) // 8 * 8))
        if n <= tm:
            # Guarantee >= 2 row tiles whenever possible so ("parallel", ...)
            # can shard the grid across both v7x TensorCores.
            tm = max(8, _round_up((n + 1) // 2, 8))
    else:
        tm = max(8, _round_up(row_tile, 8))

    n_pad = _round_up(max(n, 1), tm)
    n_row = n_pad // tm

    # Only materialize padded copies when actually needed.
    def _pad(x):
        if n_pad == n and hidden_pad == hidden:
            return x
        return jnp.pad(x, ((0, n_pad - n), (0, hidden_pad - hidden)))

    a_p = _pad(a2)
    b_p = _pad(b2)
    c_p = _pad(c2)

    # nn.Linear computes x @ W^T; pass W^T (padded) in the input dtype so bf16
    # inputs take the MXU-native bf16 path and the resident weight is halved.
    w_t = weight.T.astype(in_dtype)
    if hidden_pad != hidden:
        w_t = jnp.pad(w_t, ((0, hidden_pad - hidden), (0, hidden_pad - hidden)))

    # Rows are the OUTER grid axis: a/b/c blocks keep the same block index over
    # the inner column axis, so each input row-tile is DMA'd from HBM once.
    row_spec = pl.BlockSpec((tm, hidden_pad), lambda i, j: (i, 0))
    w_spec = pl.BlockSpec((hidden_pad, tn), lambda i, j: (0, j))
    out_spec = pl.BlockSpec((tm, tn), lambda i, j: (i, j))

    # VMEM budget derived from the actual tile sizes.
    vmem_est = (3 * 2 * tm * hidden_pad * itemsize    # a, b, c (double-buffered)
                + 3 * tm * hidden_pad * itemsize      # in-kernel loads
                + 2 * hidden_pad * tn * itemsize      # weight (double-buffered)
                + 2 * tm * tn * itemsize              # output (double-buffered)
                + 8 * tm * tn * 4)                    # f32 softmax/gating temps
    vmem_limit = int(min(64 * 1024 * 1024, max(32 * 1024 * 1024, vmem_est)))

    weight_reads = 1 if n_col == 1 else n_row
    cost = pl.CostEstimate(
        flops=3 * 2 * n_pad * hidden_pad * hidden_pad,
        transcendentals=3 * n_pad * hidden_pad,
        bytes_accessed=(4 * n_pad * hidden_pad * itemsize
                        + weight_reads * hidden_pad * hidden_pad * itemsize),
    )

    kernel = functools.partial(
        _gated_fusion_kernel,
        tn=tn,
        single_col_tile=(n_col == 1),
        approx_recip=bool(in_dtype == jnp.bfloat16),
    )

    out_p = pl.pallas_call(
        kernel,
        out_shape=jax.ShapeDtypeStruct((n_pad, hidden_pad), in_dtype),
        grid_spec=pltpu.PrefetchScalarGridSpec(
            num_scalar_prefetch=0,
            grid=(n_row, n_col),
            in_specs=[row_spec, row_spec, row_spec, w_spec],
            out_specs=out_spec,
        ),
        compiler_params=pltpu.CompilerParams(
            dimension_semantics=("parallel", "arbitrary"),
            vmem_limit_bytes=vmem_limit,
        ),
        cost_estimate=cost,
    )(a_p, b_p, c_p, w_t)

    if n_pad == n and hidden_pad == hidden:
        return out_p.reshape(orig_shape)
    return out_p[:n, :hidden].reshape(orig_shape)


def _reference(a, b, c, weight):
    # Pure-JAX reference mirroring the PyTorch code.
    fa = a @ weight.T
    fb = b @ weight.T
    fc = c @ weight.T
    utters = jnp.stack([a, b, c], axis=-2)           # (..., 3, H)
    utters_fc = jnp.stack([fa, fb, fc], axis=-2)     # (..., 3, H)
    sm = jax.nn.softmax(utters_fc, axis=-2)
    return jnp.sum(sm * utters, axis=-2)


if __name__ == "__main__":
    key = jax.random.PRNGKey(0)
    batch, seq, hidden = 2, 8, 32
    k_a, k_b, k_c, k_w = jax.random.split(key, 4)

    a = jax.random.normal(k_a, (batch, seq, hidden), dtype=jnp.float32)
    b = jax.random.normal(k_b, (batch, seq, hidden), dtype=jnp.float32)
    c = jax.random.normal(k_c, (batch, seq, hidden), dtype=jnp.float32)

    # Deterministic Linear weight (hidden, hidden), ~ PyTorch kaiming-uniform range.
    bound = 1.0 / (hidden ** 0.5)
    weight = jax.random.uniform(
        k_w, (hidden, hidden), dtype=jnp.float32, minval=-bound, maxval=bound
    )

    # f32 path.
    out = jax.block_until_ready(multimodal_gated_fusion(a, b, c, weight))
    ref = _reference(a, b, c, weight)
    assert out.shape == (batch, seq, hidden)
    assert jnp.allclose(out, ref, atol=2e-5, rtol=2e-5), "f32 mismatch vs reference"

    # bf16 path (MXU-native bf16 matmuls, f32 softmax/gating, bf16 output).
    a16 = a.astype(jnp.bfloat16)
    b16 = b.astype(jnp.bfloat16)
    c16 = c.astype(jnp.bfloat16)
    out16 = jax.block_until_ready(multimodal_gated_fusion(a16, b16, c16, weight))
    ref16 = _reference(
        a16.astype(jnp.float32), b16.astype(jnp.float32), c16.astype(jnp.float32),
        weight.astype(jnp.bfloat16).astype(jnp.float32))
    assert out16.dtype == jnp.bfloat16
    assert jnp.allclose(out16.astype(jnp.float32), ref16, atol=5e-2, rtol=5e-2), \
        "bf16 mismatch vs reference"

    print("KERNEL_OK")
</pallas_src>

<mosaic_0001>
module attributes {stable_mosaic.version = 11 : i64} {
  func.func @_gated_fusion_kernel(%arg0: i32, %arg1: i32, %arg2: memref<8x128xf32, #tpu.memory_space<vmem>>, %arg3: memref<8x128xf32, #tpu.memory_space<vmem>>, %arg4: memref<8x128xf32, #tpu.memory_space<vmem>>, %arg5: memref<128x128xf32, #tpu.memory_space<vmem>>, %arg6: memref<8x128xf32, #tpu.memory_space<vmem>>) attributes {dimension_semantics = [#tpu.dimension_semantics<parallel>, #tpu.dimension_semantics<arbitrary>], iteration_bounds = array<i64: 2, 1>, scalar_prefetch = 0 : i64, scratch_operands = 0 : i64, tpu.core_type = #tpu.core_type<tc>, window_params = [{transform_indices = @transform_0, window_bounds = array<i64: 8, 128>}, {transform_indices = @transform_1, window_bounds = array<i64: 8, 128>}, {transform_indices = @transform_2, window_bounds = array<i64: 8, 128>}, {transform_indices = @transform_3, window_bounds = array<i64: 128, 128>}, {transform_indices = @transform_4, window_bounds = array<i64: 8, 128>}]} {
    %c0 = arith.constant 0 : index
    %c0_0 = arith.constant 0 : index
    %0 = vector.load %arg2[%c0, %c0_0] : memref<8x128xf32, #tpu.memory_space<vmem>>, vector<8x128xf32>
    %c0_1 = arith.constant 0 : index
    %c0_2 = arith.constant 0 : index
    %1 = vector.load %arg3[%c0_1, %c0_2] : memref<8x128xf32, #tpu.memory_space<vmem>>, vector<8x128xf32>
    %c0_3 = arith.constant 0 : index
    %c0_4 = arith.constant 0 : index
    %2 = vector.load %arg4[%c0_3, %c0_4] : memref<8x128xf32, #tpu.memory_space<vmem>>, vector<8x128xf32>
    %c0_5 = arith.constant 0 : index
    %c0_6 = arith.constant 0 : index
    %3 = vector.load %arg5[%c0_5, %c0_6] : memref<128x128xf32, #tpu.memory_space<vmem>>, vector<128x128xf32>
    %cst = arith.constant dense<0.000000e+00> : vector<8x128xf32>
    %4 = tpu.matmul %0, %3, %cst {dimension_numbers = #tpu.dot_dimension_numbers<[1], [0], [0], [1], [0, 0, 1, 1], [], []>} : vector<8x128xf32>, vector<128x128xf32>, vector<8x128xf32> -> vector<8x128xf32>
    %cst_7 = arith.constant dense<0.000000e+00> : vector<8x128xf32>
    %5 = tpu.matmul %1, %3, %cst_7 {dimension_numbers = #tpu.dot_dimension_numbers<[1], [0], [0], [1], [0, 0, 1, 1], [], []>} : vector<8x128xf32>, vector<128x128xf32>, vector<8x128xf32> -> vector<8x128xf32>
    %cst_8 = arith.constant dense<0.000000e+00> : vector<8x128xf32>
    %6 = tpu.matmul %2, %3, %cst_8 {dimension_numbers = #tpu.dot_dimension_numbers<[1], [0], [0], [1], [0, 0, 1, 1], [], []>} : vector<8x128xf32>, vector<128x128xf32>, vector<8x128xf32> -> vector<8x128xf32>
    %7 = arith.maximumf %4, %5 : vector<8x128xf32>
    %8 = arith.maximumf %7, %6 : vector<8x128xf32>
    %9 = arith.subf %4, %8 : vector<8x128xf32>
    %10 = math.exp %9 : vector<8x128xf32>
    %11 = arith.mulf %10, %0 : vector<8x128xf32>
    %12 = arith.subf %5, %8 : vector<8x128xf32>
    %13 = math.exp %12 : vector<8x128xf32>
    %14 = arith.mulf %13, %1 : vector<8x128xf32>
    %15 = arith.addf %11, %14 : vector<8x128xf32>
    %16 = arith.addf %10, %13 : vector<8x128xf32>
    %17 = arith.subf %6, %8 : vector<8x128xf32>
    %18 = math.exp %17 : vector<8x128xf32>
    %19 = arith.mulf %18, %2 : vector<8x128xf32>
    %20 = arith.addf %15, %19 : vector<8x128xf32>
    %21 = arith.addf %16, %18 : vector<8x128xf32>
    %22 = tpu.reciprocal %21 : vector<8x128xf32> -> vector<8x128xf32>
    %23 = arith.mulf %20, %22 : vector<8x128xf32>
    %c0_9 = arith.constant 0 : index
    %c0_10 = arith.constant 0 : index
    %24 = vector.load %arg6[%c0_9, %c0_10] : memref<8x128xf32, #tpu.memory_space<vmem>>, vector<8x128xf32>
    tpu.vector_store %arg6[%c0_9, %c0_10], %23 {strides = array<i32>} : memref<8x128xf32, #tpu.memory_space<vmem>>, vector<8x128xf32>,
    return
  }
  func.func @transform_0(%arg0: i32, %arg1: i32) -> (i32, i32) {
    %c0_i32 = arith.constant 0 : i32
    %c0_i32_0 = arith.constant 0 : i32
    return %arg0, %c0_i32 : i32, i32
  }
  func.func @transform_1(%arg0: i32, %arg1: i32) -> (i32, i32) {
    %c0_i32 = arith.constant 0 : i32
    %c0_i32_0 = arith.constant 0 : i32
    return %arg0, %c0_i32 : i32, i32
  }
  func.func @transform_2(%arg0: i32, %arg1: i32) -> (i32, i32) {
    %c0_i32 = arith.constant 0 : i32
    %c0_i32_0 = arith.constant 0 : i32
    return %arg0, %c0_i32 : i32, i32
  }
  func.func @transform_3(%arg0: i32, %arg1: i32) -> (i32, i32) {
    %c0_i32 = arith.constant 0 : i32
    %c0_i32_0 = arith.constant 0 : i32
    return %c0_i32, %arg1 : i32, i32
  }
  func.func @transform_4(%arg0: i32, %arg1: i32) -> (i32, i32) {
    %c0_i32 = arith.constant 0 : i32
    return %arg0, %arg1 : i32, i32
  }
}

</mosaic_0001>

<bundles_post_ra>
// kernel: tpu_custom_call.1
= control target key start
LH: loop header
LB: loop body
LE: loop exit
PB: predicated region body
PF: predicated region fallthrough
CT: control target
= control target key end

     0   :  { %s1642_s0 = inlined_call_operand.hbm [shape: f32[16,128], index: 0, kind: input, shape index: {}]   ;;  %s1643_s1 = inlined_call_operand.hbm [shape: f32[16,128], index: 1, kind: input, shape index: {}]   ;;  %s1644_s2 = inlined_call_operand.hbm [shape: f32[16,128], index: 2, kind: input, shape index: {}]   ;;  %s1645_s3 = inlined_call_operand.hbm [shape: f32[128,128], index: 3, kind: input, shape index: {}]   ;;  %s1646_s4 = inlined_call_operand.hbm [shape: f32[16,128], index: 4, kind: output, shape index: {}]  }
   0x1   :  { %1664 = sst [smem:[#allocation21_spill]] %s1643_s1 }
   0x2   :  { %1665 = sst [smem:[#allocation22_spill]] %s1646_s4 }
   0x3   :  { %9 = vsyncpa [#allocation3], 0 }
   0x4   :  { %11 = vsyncpa [#allocation3 + $0x1], 0 }
   0x5   :  { %12 = vsyncpa [#allocation6], 0 }
   0x6   :  { %14 = vsyncpa [#allocation6 + $0x1], 0 }
   0x7   :  { %15 = vsyncpa [#allocation9], 0 }
   0x8   :  { %16 = vsyncpa [#allocation4], 0 }
   0x9   :  { %18 = vsyncpa [#allocation4 + $0x1], 0  ;;  %s1309_s15 = smov 0   ;;  %s1311_s16 = smov 0  }
   0xa   :  { %s1313_s17 = smov 0   ;;  %s1315_s18 = smov 0  }
   0xb   :  { %s1317_s19 = smov 0   ;;  %s1319_s20 = smov 0  }
   0xc LB: > { %1666 = sst [smem:[#allocation15_spill]] %s1252_s15  ;;  %s36_s21 = sadd.s32 1, %s1268_s19  ;;  %s1272_s20 = sphi %s1319_s20, %s24_s20   ;;  %s1268_s19 = sphi %s1317_s19, %s1698_s19   ;;  %s1264_s18 = sphi %s1315_s18, %s1697_s18   ;;  %s1260_s17 = sphi %s1313_s17, %s1701_s17   ;;  %s1256_s16 = sphi %s1311_s16, %s1700_s16   ;;  %s1252_s15 = sphi %s1309_s15, %s1699_s15  }
   0xd   : > { %1667 = sst [smem:[#allocation16_spill]] %s1268_s19  ;;  %s43_s22 = sadd.s32 1, %s1260_s17 }
   0xe   : > { %1668 = sst [smem:[#allocation17_spill]] %s1272_s20  ;;  %p38_p0 = scmp.ge.s32.totalorder %s36_s21, 2 }
   0xf   : > { %p1647_p1 = scmp.ne.s32.totalorder %s1260_s17, %s1256_s16  ;;  %p51_p2 = scmp.eq.s32.totalorder %s1272_s20, 0 }
  0x10   : > { %s1703_s21 = smov (%p38_p0, %s36_s21), 0  ;;  %p999_p5 = scmp.lt.s32.totalorder %s1272_s20, 2 }
  0x11   : > { %1669 = sst [smem:[#allocation18_spill]] %s1703_s21  ;;  %p52_p4 = por %p51_p2, %p1647_p1 }
  0x12   : > { %s40_s23 = ssub.s32 %s1268_s19, %s1703_s21  ;;  %s1648_s24 = sand.u32 1, %s1260_s17  }
  0x13   : > { %p41_p6 = scmp.eq.s32.totalorder %s40_s23, 0  ;;  %s1356_s25 = sshll.u32 %s1648_s24, 3 }
  0x14   : > { %s1359_s26 = sshll.u32 %s1268_s19, 7  ;;  %p1361_p7 = pnand %p999_p5, %p52_p4 }
  0x15   : > { %s1366_s28 = scalar_select %p41_p6, %s1260_s17, %s43_s22  }
  0x16   : > { %s1670_s27 = scalar_select %p1361_p7, 1, 0 }
  0x17   : > { %1671 = sst [smem:[#allocation19_spill]] %s1366_s28  ;;  %s219_s29 = sand.u32 1, %s1272_s20  }
  0x18   : > { %s1672_s1 = sld [smem:[#allocation21_spill]]  ;;  %s223_s7 = scalar_lea.vmem [#allocation5], %s1356_s25 }
  0x19   : > { %s230_s8 = sshll.u32 %s223_s7, 4  ;;  %s1378_s9 = scalar_lea.sflag [#allocation6], %s219_s29  ;;  %s1376_s8 = int_to_ptr.vmem [resolvable:$true] %s230_s8 }
  0x1a   : > { %p1384_p9 = pneg %p1361_p7 }
  0x1c   : > { %s1673_s11 = scalar_select %p1384_p9, 1, 0 }
  0x1e   : > { %s1373_s6 = scalar_lea.hbm %s1672_s1, %s1359_s26  ;;  %s1069_s14 = scalar_lea.hbm %s1672_s1, 256 }
  0x1f   : > { %s1064_s10 = scalar_lea.hbm %s1373_s6, 128  ;;  %p1070_p12 = scmp.lt.u32.totalorder %s1373_s6, %s1672_s1 }
  0x20   : > { %p1065_p8 = scmp.ne.s32.totalorder %s1373_s6, %s1064_s10  ;;  %p1071_p13 = scmp.lt.u32.totalorder %s1069_s14, %s1064_s10 }
  0x21   : > { %p1073_p2 = scmp.lt.u32.totalorder %s1064_s10, %s1373_s6 }
  0x22   : > { %p1067_p10 = pnand %p1384_p9, %p1065_p8  ;;  %p1072_p0 = por %p1071_p13, %p1070_p12 }
  0x24   : > { %p1068_p11 = pneg %p1067_p10  ;;  %p1074_p4 = por %p1073_p2, %p1072_p0 }
  0x26   : > { %p1075_p5 = pnand %p1074_p4, %p1068_p11 }
  0x28   : > { %1078 = shalt.err (!%p1075_p5)
}
  0x29   : > { %s1079_s29 = scalar_lea.vmem %s1376_s8, 128  ;;  %s1274_s30 = smov [#allocation5]  }
  0x2a   : > { %p1080_p6 = scmp.ne.s32.totalorder %s1376_s8, %s1079_s29  ;;  %s1084_s5 = sshll.u32 %s1274_s30, 4  ;;  %s1085_s5 = int_to_ptr.vmem [resolvable:$false] %s1084_s5 }
  0x2b   : > { %s1086_s7 = scalar_lea.vmem %s1085_s5, 256  ;;  %p1087_p3 = scmp.lt.s32.totalorder %s1376_s8, %s1085_s5 }
  0x2c   : > { %p1082_p8 = pnand %p1080_p6, %p1384_p9  ;;  %p1088_p1 = scmp.lt.s32.totalorder %s1086_s7, %s1079_s29 }
  0x2e   : > { %p1083_p10 = pneg %p1082_p8  ;;  %p1089_p12 = por %p1088_p1, %p1087_p3 }
  0x30   : > { %p1090_p13 = pnand %p1089_p12, %p1083_p10 }
  0x32   : > { %1093 = shalt.err (!%p1090_p13)
}
  0x33   : > { %990 = dma.hbm_to_vmem [thread:$0]  (!%p1361_p7), %s1373_s6, 128, %s1376_s8, %s1378_s9  }
  0x34   : > { %s1409_s10 = sadd.s32 4294967295, %s1272_s20   ;;  %s720_s12 = sadd.s32 4294967294, %s1272_s20  }
  0x35   : > { %p56_p1 = scmp.ne.s32.totalorder %s1256_s16, %s1252_s15  ;;  %p1651_p3 = scmp.eq.s32.totalorder %s1409_s10, 0 }
  0x36   : > { %p160_p11 = scmp.eq.s32.totalorder %s1409_s10, 1  ;;  %p166_p0 = scmp.eq.s32.totalorder %s720_s12, 1 }
  0x37   : > { %p721_p2 = scmp.ge.s32.totalorder %s1272_s20, 1  ;;  %p1419_p4 = por %p1651_p3, %p56_p1 }
  0x38   : > { %p1675_p5 = scmp.ne.s32.totalorder %s1260_s17, %s1256_s16  ;;  %p1430_p8 = por %p166_p0, %p56_p1 }
  0x39   : > { %s1674_s13 = scalar_select %p1419_p4, 1, 0 }
  0x3a   : > { %p1426_p6 = por %p160_p11, %p1675_p5  ;;  %p173_p10 = scmp.lt.s32.totalorder %s1272_s20, 3 }
  0x3b   : > { %s1677_s8 = scalar_select %p1430_p8, 1, 0 }
  0x3c   : > { %s1676_s6 = scalar_select %p1426_p6, 1, 0 }
  0x3d   : > { %1678 = sst [smem:[#allocation20_spill]] %s1677_s8  ;;  %p1435_p12 = pnand %p721_p2, %p173_p10 }
  0x3e   : > { %s1275_s22 = smov [#allocation8]   ;;  %s1453_s7 = scalar_lea.hbm %s1642_s0, %s1359_s26 }
  0x3f   : > { %s1679_s14 = scalar_select %p1435_p12, 1, 0 }
  0x40   : > { %s187_s23 = sshll.u32 %s1275_s22, 4  ;;  %p980_p13 = pneg %p1435_p12  ;;  %s1439_s23 = int_to_ptr.vmem [resolvable:$true] %s187_s23 }
  0x41   : > { %s205_s12 = scalar_lea.vmem [#allocation2], %s1356_s25  ;;  %s1094_s21 = scalar_lea.hbm %s1645_s3, 2048 }
  0x42   : > { %p1445_p11 = pnand %p980_p13, %p1651_p3  ;;  %s212_s24 = sshll.u32 %s205_s12, 4  ;;  %s1456_s24 = int_to_ptr.vmem [resolvable:$true] %s212_s24 }
  0x43   : > { %p1095_p1 = scmp.ne.s32.totalorder %s1645_s3, %s1094_s21  ;;  %p1101_p10 = scmp.lt.u32.totalorder %s1094_s21, %s1645_s3 }
  0x44   : > { %p1096_p0 = pneg %p1445_p11 }
  0x46   : > { %p1097_p2 = pnand %p1096_p0, %p1095_p1 }
  0x48   : > { %p1098_p5 = pneg %p1097_p2 }
  0x4a   : > { %p1103_p13 = pnand %p1101_p10, %p1098_p5 }
  0x4c   : > { %1106 = shalt.err (!%p1103_p13)
}
  0x4d   : > { %s1107_s12 = scalar_lea.vmem %s1439_s23, 2048  ;;  %p1115_p4 = scmp.lt.s32.totalorder %s1439_s23, %s1439_s23 }
  0x4e   : > { %p1108_p3 = scmp.ne.s32.totalorder %s1439_s23, %s1107_s12  ;;  %p1116_p12 = scmp.lt.s32.totalorder %s1107_s12, %s1107_s12 }
  0x50   : > { %p1110_p8 = pnand %p1108_p3, %p1096_p0  ;;  %p1117_p7 = por %p1116_p12, %p1115_p4 }
  0x52   : > { %p1111_p6 = pneg %p1110_p8 }
  0x54   : > { %p1118_p9 = pnand %p1117_p7, %p1111_p6 }
  0x56   : > { %1121 = shalt.err (!%p1118_p9)
}
  0x57   : > { %s1276_s1 = smov 128   ;;  %s1277_s19 = smov 8  }
  0x58   : > { %983 = dma.hbm_to_vmem [thread:$0]  (!%p1445_p11), %s1645_s3, 2048, %s1439_s23, [#allocation9], %s1276_s1, %s1276_s1, %s1277_s19  }
  0x59   : > { %s1681_s22 = sand.u32 1, %s1260_s17   ;;  %s1122_s5 = scalar_lea.hbm %s1453_s7, 128 }
  0x5a   : > { %s202_s30 = scalar_lea.sflag [#allocation3], %s1681_s22  ;;  %p1123_p7 = scmp.ne.s32.totalorder %s1453_s7, %s1122_s5 }
  0x5b   : > { %p1682_p9 = scmp.ne.s32.totalorder %s1673_s11, 0  ;;  %s1127_s8 = scalar_lea.hbm %s1642_s0, 256 }
  0x5c   : > { %p1128_p6 = scmp.lt.u32.totalorder %s1453_s7, %s1642_s0  ;;  %p1129_p8 = scmp.lt.u32.totalorder %s1127_s8, %s1122_s5 }
  0x5d   : > { %p1125_p3 = pnand %p1123_p7, %p1682_p9  ;;  %p1131_p1 = scmp.lt.u32.totalorder %s1122_s5, %s1453_s7 }
  0x5e   : > { %p1130_p12 = por %p1129_p8, %p1128_p6 }
  0x5f   : > { %p1126_p4 = pneg %p1125_p3 }
  0x60   : > { %p1132_p0 = por %p1131_p1, %p1130_p12 }
  0x62   : > { %p1133_p11 = pnand %p1132_p0, %p1126_p4 }
  0x64   : > { %1136 = shalt.err (!%p1133_p11)
}
  0x65   : > { %s1137_s23 = scalar_lea.vmem %s1456_s24, 128  ;;  %s1278_s20 = smov [#allocation2]  }
  0x66   : > { %p1138_p2 = scmp.ne.s32.totalorder %s1456_s24, %s1137_s23  ;;  %s1142_s29 = sshll.u32 %s1278_s20, 4  ;;  %s1143_s29 = int_to_ptr.vmem [resolvable:$false] %s1142_s29 }
  0x67   : > { %s1144_s4 = scalar_lea.vmem %s1143_s29, 256  ;;  %p1145_p13 = scmp.lt.s32.totalorder %s1456_s24, %s1143_s29 }
  0x68   : > { %p1140_p5 = pnand %p1138_p2, %p1682_p9  ;;  %p1146_p7 = scmp.lt.s32.totalorder %s1144_s4, %s1137_s23 }
  0x6a   : > { %p1141_p10 = pneg %p1140_p5  ;;  %p1147_p3 = por %p1146_p7, %p1145_p13 }
  0x6c   : > { %p1148_p6 = pnand %p1147_p3, %p1141_p10 }
  0x6e   : > { %1151 = shalt.err (!%p1148_p6)
}
  0x6f   : > { %p1683_p4 = scmp.ne.s32.totalorder %s1670_s27, 0  ;;  %s1506_s1 = scalar_lea.hbm %s1644_s2, %s1359_s26 }
  0x70   : > { %s241_s19 = scalar_lea.vmem [#allocation7], %s1356_s25  ;;  %s1152_s28 = scalar_lea.hbm %s1506_s1, 128 }
  0x71   : > { %987 = dma.hbm_to_vmem [thread:$0]  (!%p1683_p4), %s1453_s7, 128, %s1456_s24, %s202_s30  }
  0x72   : > { %s248_s21 = sshll.u32 %s241_s19, 4  ;;  %p1153_p8 = scmp.ne.s32.totalorder %s1506_s1, %s1152_s28  ;;  %s249_s21 = int_to_ptr.vmem [resolvable:$true] %s248_s21 }
  0x73   : > { %s1157_s24 = scalar_lea.hbm %s1644_s2, 256  ;;  %p1158_p0 = scmp.lt.u32.totalorder %s1506_s1, %s1644_s2 }
  0x74   : > { %p1155_p12 = pnand %p1153_p8, %p1682_p9  ;;  %p1159_p11 = scmp.lt.u32.totalorder %s1157_s24, %s1152_s28 }
  0x75   : > { %p1161_p5 = scmp.lt.u32.totalorder %s1152_s28, %s1506_s1 }
  0x76   : > { %p1156_p1 = pneg %p1155_p12  ;;  %p1160_p2 = por %p1159_p11, %p1158_p0 }
  0x78   : > { %p1162_p10 = por %p1161_p5, %p1160_p2 }
  0x7a   : > { %p1163_p13 = pnand %p1162_p10, %p1156_p1 }
  0x7c   : > { %1166 = shalt.err (!%p1163_p13)
}
  0x7d   : > { %s1167_s25 = scalar_lea.vmem %s249_s21, 128  ;;  %s1279_s26 = smov [#allocation7]  }
  0x7e   : > { %p1168_p7 = scmp.ne.s32.totalorder %s249_s21, %s1167_s25  ;;  %s1172_s12 = sshll.u32 %s1279_s26, 4  ;;  %s1173_s12 = int_to_ptr.vmem [resolvable:$false] %s1172_s12 }
  0x7f   : > { %s1174_s23 = scalar_lea.vmem %s1173_s12, 256  ;;  %p1175_p8 = scmp.lt.s32.totalorder %s249_s21, %s1173_s12 }
  0x80   : > { %p1170_p3 = pnand %p1168_p7, %p1682_p9  ;;  %p1176_p12 = scmp.lt.s32.totalorder %s1174_s23, %s1167_s25 }
  0x82   : > { %p1171_p6 = pneg %p1170_p3  ;;  %p1177_p4 = por %p1176_p12, %p1175_p8 }
  0x84   : > { %p1178_p0 = pnand %p1177_p4, %p1171_p6 }
  0x86   : > { %1181 = shalt.err (!%p1178_p0)
}
  0x87   : > { %p1684_p11 = scmp.ne.s32.totalorder %s1670_s27, 0  ;;  %p1685_p1 = scmp.ne.s32.totalorder %s1679_s14, 0 }
  0x88   : > { %s1530_s11 = sand.u32 (!%p1685_p1), 1, %s1256_s16   ;;  %p1686_p9 = scmp.ne.s32.totalorder (!%p1685_p1), %s1674_s13, 0 }
  0x89   : > { %993 = dma.hbm_to_vmem [thread:$0]  (!%p1684_p11), %s1506_s1, 128, %s249_s21, %s1378_s9  }
  0x8a   : > { %257 = sbr.rel (%p1685_p1) target bundleno = 479 (0x1df), region = 36  ;;  %s1533_s20 = sshll.u32 (!%p1685_p1), %s1530_s11, 3 }
  0x8b   : > { %s260_s29 = scalar_lea.sflag (!%p1685_p1), [#allocation3], %s1530_s11  ;;  %s263_s4 = scalar_lea.vmem (!%p1685_p1), [#allocation2], %s1533_s20 }
  0x91   : > { %1235 = dma.done.wait (%p1686_p9), %s260_s29, 128  }
  0x92   : > { %1237 = vsyncadd (%p1686_p9), %s260_s29, 4294967168  ;;  %s268_s27 = sand.u32 1, %s1409_s10   ;;  %s272_s14 = scalar_lea.vmem [#allocation5], %s1533_s20 }
  0x93   : > { %s269_s9 = scalar_lea.sflag [#allocation6], %s268_s27 }
  0x94   : > { %1239 = dma.done.wait (%p1686_p9), %s269_s9, 256  }
  0x95   : > { %1241 = vsyncadd (%p1686_p9), %s269_s9, 4294967040  ;;  %s281_s15 = scalar_lea.vmem [#allocation7], %s1533_s20  ;;  %p1687_p4 = scmp.eq.s32.totalorder %s1409_s10, 0 }
  0x97   : > { %1243 = dma.done.wait (%p1687_p4), [#allocation9], 2048   ;;  %p1688_p2 = pmov %p1687_p4 }
  0x98   : > { %v1280_v0 = vmov 0.0|0.0   ;;  %vm1281_vm0 = vmmov 0   ;;  %v1282_v1 = vmov 0.0   ;;  %v323_v2 = vld [vmem:[#allocation8] sm:$0xff]  ;;  %v324_v3 = vld [vmem:[#allocation8 + $0x8] sm:$0xff]  ;;  %v325_v4 = vld [vmem:[#allocation8 + $0x10] sm:$0xff] }
  0x99   : > { %1245 = vsyncadd (%p1688_p2), [#allocation9], 4294965248  ;;  %896 = vmatprep.subr.bf16.mxu0 %v1280_v0  ;;  %920 = vmatprep.subr.bf16.mxu1 %v1280_v0  ;;  %v897_v5 = vpack.c.bf16 %v324_v3, %v323_v2  ;;  %v326_v6 = vld [vmem:[#allocation8 + $0x18] sm:$0xff]  ;;  %v327_v8 = vld [vmem:[#allocation8 + $0x20] sm:$0xff]  ;;  %s737_s10 = sshll.u32 %s1264_s18, 7  ;;  %s319_s13 = scalar_lea.vmem [#allocation10], %s1533_s20 }
  0x9a   : > { %823 = vmatprep.mubr.msk.f32.mxu0 %vm1281_vm0, %v1282_v1  ;;  %858 = vmatprep.mubr.msk.f32.mxu1 %vm1281_vm0, %v1282_v1  ;;  %v900_v7 = vpack.c.bf16 %v326_v6, %v325_v4  ;;  %v328_v9 = vld [vmem:[#allocation8 + $0x28] sm:$0xff]  ;;  %v329_v11 = vld [vmem:[#allocation8 + $0x30] sm:$0xff]  ;;  %v330_v12 = vld [vmem:[#allocation8 + $0x38] sm:$0xff]  ;;  %s585_s8 = sshll.u32 %s319_s13, 4  ;;  %s1689_s21 = sld [smem:[#allocation22_spill]]  ;;  %s1595_s8 = int_to_ptr.vmem [resolvable:$true] %s585_s8 }
  0x9b   : > { %898 = vmatpush3.bf16.msra.mxu0 %v897_v5  ;;  %922 = vmatpush3.bf16.msra.mxu1 %v897_v5  ;;  %v903_v10 = vpack.c.bf16 %v328_v9, %v327_v8  ;;  %v906_v13 = vpack.c.bf16 %v330_v12, %v329_v11  ;;  %v331_v14 = vld [vmem:[#allocation8 + $0x40] sm:$0xff]  ;;  %v332_v15 = vld [vmem:[#allocation8 + $0x48] sm:$0xff]  ;;  %v333_v17 = vld [vmem:[#allocation8 + $0x50] sm:$0xff]  ;;  %s571_s22 = scalar_lea.sflag [#allocation4], %s1530_s11  ;;  %s1182_s5 = scalar_lea.vmem %s1595_s8, 128 }
  0x9c   : > { %899 = vmatprep.subr.bf16.mxu0 %v1280_v0  ;;  %923 = vmatprep.subr.bf16.mxu1 %v1280_v0  ;;  %v909_v16 = vpack.c.bf16 %v332_v15, %v331_v14  ;;  %v334_v18 = vld [vmem:[#allocation8 + $0x58] sm:$0xff]  ;;  %v335_v20 = vld [vmem:[#allocation8 + $0x60] sm:$0xff]  ;;  %v336_v21 = vld [vmem:[#allocation8 + $0x68] sm:$0xff]  ;;  %p1183_p5 = scmp.ne.s32.totalorder %s1595_s8, %s1182_s5  ;;  %p1690_p10 = scmp.ne.s32.totalorder %s1676_s6, 0 }
  0x9d   : > { %v912_v19 = vpack.c.bf16 %v334_v18, %v333_v17  ;;  %v915_v22 = vpack.c.bf16 %v336_v21, %v335_v20  ;;  %v337_v23 = vld [vmem:[#allocation8 + $0x70] sm:$0xff]  ;;  %v338_v24 = vld [vmem:[#allocation8 + $0x78] sm:$0xff]  ;;  %v321_v27 = vld [vmem:[%s272_s14] sm:$0xff]  ;;  %s1283_s18 = smov [#allocation10]  }
  0x9e   : > { %v918_v25 = vpack.c.bf16 %v338_v24, %v337_v23  ;;  %v320_v26 = vld [vmem:[%s263_s4] sm:$0xff]  ;;  %p1184_p13 = pnand %p1183_p5, %p1690_p10  ;;  %s1186_s24 = sshll.u32 %s1283_s18, 4  ;;  %s1187_s24 = int_to_ptr.vmem [resolvable:$false] %s1186_s24 }
  0x9f   : > { %901 = vmatpush3.bf16.msra.mxu0 %v900_v7  ;;  %925 = vmatpush3.bf16.msra.mxu1 %v900_v7  ;;  %v322_v28 = vld [vmem:[%s281_s15] sm:$0xff]  ;;  %s1188_s7 = scalar_lea.vmem %s1187_s24, 256  ;;  %p1189_p3 = scmp.lt.s32.totalorder %s1595_s8, %s1187_s24 }
  0xa0   : > { %902 = vmatprep.subr.bf16.mxu0 %v1280_v0  ;;  %926 = vmatprep.subr.bf16.mxu1 %v1280_v0  ;;  %s1593_s28 = scalar_lea.hbm %s1689_s21, %s737_s10  ;;  %p1185_p7 = pneg %p1184_p13 }
  0xa1   : > { %p1190_p6 = scmp.lt.s32.totalorder %s1188_s7, %s1182_s5 }
  0xa3   : > { %904 = vmatpush3.bf16.msra.mxu0 %v903_v10  ;;  %928 = vmatpush3.bf16.msra.mxu1 %v903_v10  ;;  %p1191_p8 = por %p1190_p6, %p1189_p3 }
  0xa4   : > { %905 = vmatprep.subr.bf16.mxu0 %v1280_v0  ;;  %929 = vmatprep.subr.bf16.mxu1 %v1280_v0 }
  0xa5   : > { %p1192_p12 = pnand %p1191_p8, %p1185_p7 }
  0xa7   : > { %907 = vmatpush3.bf16.msra.mxu0 %v906_v13  ;;  %931 = vmatpush3.bf16.msra.mxu1 %v906_v13 }
  0xa8   : > { %908 = vmatprep.subr.bf16.mxu0 %v1280_v0  ;;  %932 = vmatprep.subr.bf16.mxu1 %v1280_v0 }
  0xab   : > { %910 = vmatpush3.bf16.msra.mxu0 %v909_v16  ;;  %934 = vmatpush3.bf16.msra.mxu1 %v909_v16 }
  0xac   : > { %911 = vmatprep.subr.bf16.mxu0 %v1280_v0  ;;  %935 = vmatprep.subr.bf16.mxu1 %v1280_v0 }
  0xaf   : > { %913 = vmatpush3.bf16.msra.mxu0 %v912_v19  ;;  %937 = vmatpush3.bf16.msra.mxu1 %v912_v19 }
  0xb0   : > { %914 = vmatprep.subr.bf16.mxu0 %v1280_v0  ;;  %938 = vmatprep.subr.bf16.mxu1 %v1280_v0 }
  0xb3   : > { %916 = vmatpush3.bf16.msra.mxu0 %v915_v22  ;;  %940 = vmatpush3.bf16.msra.mxu1 %v915_v22 }
  0xb4   : > { %917 = vmatprep.subr.bf16.mxu0 %v1280_v0  ;;  %941 = vmatprep.subr.bf16.mxu1 %v1280_v0 }
  0xb7   : > { %919 = vmatpush3.bf16.msra.mxu0 %v918_v25  ;;  %943 = vmatpush3.bf16.msra.mxu1 %v918_v25 }
  0xb8   : > { %944 = vmatprep.subr.bf16.mxu0 %v1280_v0 }
  0xba   : > { %824 = vmatmul.mubr.f32.vlgmr.msra.gmra.mrb[0].mxu0 %v320_v26  ;;  %859 = vmatmul.mubr.f32.vlgmr.msra.gmra.mrb[0].mxu1 %v321_v27 }
  0xbb   : > { %946 = vmatpush3.bf16.msra.mxu0 %v897_v5  ;;  %893 = vmatprep.mubr.msk.f32.mxu0 %vm1281_vm0, %v1282_v1 }
  0xbc   : > { %947 = vmatprep.subr.bf16.mxu0 %v1280_v0 }
  0xbf   : > { %949 = vmatpush3.bf16.msra.mxu0 %v900_v7 }
  0xc0   : > { %950 = vmatprep.subr.bf16.mxu0 %v1280_v0 }
  0xc3   : > { %952 = vmatpush3.bf16.msra.mxu0 %v903_v10 }
  0xc4   : > { %953 = vmatprep.subr.bf16.mxu0 %v1280_v0 }
  0xc7   : > { %955 = vmatpush3.bf16.msra.mxu0 %v906_v13 }
  0xc8   : > { %956 = vmatprep.subr.bf16.mxu0 %v1280_v0 }
  0xcb   : > { %958 = vmatpush3.bf16.msra.mxu0 %v909_v16 }
  0xcc   : > { %959 = vmatprep.subr.bf16.mxu0 %v1280_v0 }
  0xcf   : > { %961 = vmatpush3.bf16.msra.mxu0 %v912_v19 }
  0xd0   : > { %962 = vmatprep.subr.bf16.mxu0 %v1280_v0 }
  0xd3   : > { %964 = vmatpush3.bf16.msra.mxu0 %v915_v22 }
  0xd4   : > { %965 = vmatprep.subr.bf16.mxu0 %v1280_v0 }
  0xd7   : > { %967 = vmatpush3.bf16.msra.mxu0 %v918_v25 }
  0xda   : > { %894 = vmatmul.mubr.f32.vlgmr.msra.gmra.mrb[2].mxu0 %v322_v28 }
 0x18d   : > { %v405_v29 = vpop.f32.mrb[0].mxu0  ;;  %v475_v30 = vpop.f32.mrb[0].mxu1 }
 0x18e   : > { %v825_v31 = vpop.f32.mrb[1].mxu0  ;;  %v549_v32 = vmax.f32 %v405_v29, %v475_v30  ;;  %v860_v33 = vpop.f32.mrb[1].mxu1 }
 0x1ad   : > { %v545_v34 = vpop.f32.mrb[2].mxu0 }
 0x1ae   : > { %v550_v35 = vmax.f32 %v549_v32, %v545_v34  ;;  %v895_v36 = vpop.f32.mrb[3].mxu0 }
 0x1b0   : > { %v551_v37 = vsub.f32 %v405_v29, %v550_v35  ;;  %v555_v38 = vsub.f32 %v475_v30, %v550_v35  ;;  %v561_v39 = vsub.f32 %v545_v34, %v550_v35 }
 0x1b2   : > { %v552_v40 = vmul.f32 1.442695, %v551_v37  ;;  %v556_v41 = vmul.f32 1.442695, %v555_v38  ;;  %v562_v42 = vmul.f32 1.442695, %v561_v39 }
 0x1b4   : > { %1056 = vpow2.f32 %v552_v40 }
 0x1b5   : > { %1058 = vpow2.f32 %v556_v41 }
 0x1b6   : > { %1060 = vpow2.f32 %v562_v42 }
 0x1be   : > { %v1057_v43 = vpop.eup %1056 }
 0x1bf   : > { %v1059_v44 = vpop.eup %1058  ;;  %v554_v45 = vmul.f32 %v1057_v43, %v320_v26 }
 0x1c0   : > { %v1061_v46 = vpop.eup %1060  ;;  %v560_v47 = vadd.f32 %v1059_v44, %v1057_v43  ;;  %v558_v48 = vmul.f32 %v1059_v44, %v321_v27 }
 0x1c1   : > { %v564_v49 = vmul.f32 %v1061_v46, %v322_v28 }
 0x1c2   : > { %v566_v50 = vadd.f32 %v1061_v46, %v560_v47  ;;  %v559_v51 = vadd.f32 %v558_v48, %v554_v45 }
 0x1c4   : > { %1062 = vrcp.f32 %v566_v50  ;;  %v565_v52 = vadd.f32 %v564_v49, %v559_v51 }
 0x1ce   : > { %v1063_v53 = vpop.eup %1062 }
 0x1cf   : > { %v568_v54 = vmul.f32 %v1063_v53, %v565_v52 }
 0x1d1   : > { %569 = vst [vmem:[%s319_s13] sm:$0xff] %v568_v54 }
 0x1d2   : > { %1195 = shalt.err (!%p1192_p12)
}
 0x1d3   : > { %s1196_s30 = scalar_lea.hbm %s1593_s28, 128  ;;  %s1200_s12 = scalar_lea.hbm %s1689_s21, 256 }
 0x1d4   : > { %p1197_p0 = scmp.ne.s32.totalorder %s1593_s28, %s1196_s30  ;;  %p1201_p9 = scmp.lt.u32.totalorder %s1593_s28, %s1689_s21 }
 0x1d5   : > { %p1202_p4 = scmp.lt.u32.totalorder %s1200_s12, %s1196_s30  ;;  %p1204_p5 = scmp.lt.u32.totalorder %s1196_s30, %s1593_s28 }
 0x1d6   : > { %p1198_p11 = pnand %p1197_p0, %p1690_p10 }
 0x1d7   : > { %p1203_p2 = por %p1202_p4, %p1201_p9 }
 0x1d8   : > { %p1199_p1 = pneg %p1198_p11 }
 0x1d9   : > { %p1205_p13 = por %p1204_p5, %p1203_p2 }
 0x1db   : > { %p1206_p7 = pnand %p1205_p13, %p1199_p1 }
 0x1dd   : > { %1209 = shalt.err (!%p1206_p7)
}
 0x1de   : > { %978 = dma.vmem_to_hbm [thread:$0]  (%p1690_p10), %s1595_s8, 128, %s1593_s28, %s571_s22  }
 0x1df PF: > { %s1691_s20 = sld [smem:[#allocation15_spill]]  ;;  %s1692_s29 = sld [smem:[#allocation20_spill]] }
 0x1e0   : > { %s1693_s4 = sld [smem:[#allocation17_spill]] }
 0x1e5   : > { %s597_s27 = sand.u32 1, %s1691_s20   ;;  %p1694_p3 = scmp.ne.s32.totalorder %s1692_s29, 0 }
 0x1e6   : > { %p1695_p6 = scmp.ge.s32.totalorder %s1693_s4, 2  ;;  %s598_s9 = scalar_lea.sflag [#allocation4], %s597_s27 }
 0x1e8   : > { %p995_p8 = pnand %p1695_p6, %p1694_p3 }
 0x1ea   : > { %1247 = dma.done.wait (!%p995_p8), %s598_s9, 128  }
 0x1eb   : > { %1249 = vsyncadd (!%p995_p8), %s598_s9, 4294967168  ;;  %s24_s20 = sadd.s32 1, %s1693_s4   ;;  %s1696_s6 = sld [smem:[#allocation19_spill]] }
 0x1ec   : > { %p21_p12 = scmp.ge.s32.totalorder %s24_s20, 4   ;;  %s1697_s18 = sld [smem:[#allocation16_spill]] }
 0x1ed   : > { %s1698_s19 = sld [smem:[#allocation18_spill]]  ;;  %s1699_s15 = smov %s1256_s16 }
 0x1ee   : > { %s1700_s16 = smov %s1260_s17  ;;  %23 = sbr.rel (!%p21_p12) target bundleno = 12 (0xc), region = 110 }
 0x1f1   : > { %s1701_s17 = smov %s1696_s6 }
 0x1f5   :  { %603 = vsyncpa [#allocation3], 1 }
 0x1f6   :  { %605 = vsyncpa [#allocation3 + $0x1], 1 }
 0x1f7   :  { %606 = vsyncpa [#allocation6], 1 }
 0x1f8   :  { %608 = vsyncpa [#allocation6 + $0x1], 1 }
 0x1f9   :  { %609 = vsyncpa [#allocation9], 1 }
 0x1fa   :  { %610 = vsyncpa [#allocation4], 1 }
 0x1fb   :  { %612 = vsyncpa [#allocation4 + $0x1], 1 }

</bundles_post_ra>
